<compile_context>
chip_gen: v6e
topology: v6e:2x2x1
jax: 0.10.0
libtpu: 0.0.40
codegen_flags: <defaults>
</compile_context>

<pallas_src>
import functools

import jax
import jax.numpy as jnp
from jax.experimental import pallas as pl
from jax.experimental.pallas import tpu as pltpu

_LN_EPS = 1e-5


def _round_up(n, m):
    return ((n + m - 1) // m) * m


def _layernorm_f32(h, gamma, beta):
    """LayerNorm over the last axis, f32 math, single elementwise pass.

    var = E[h^2] - mu^2 (one reduction sweep over h instead of two) and the
    normalization scale is folded so the main pass is (h - mu) * s + beta.
    """
    mu = jnp.mean(h, axis=-1, keepdims=True)
    msq = jnp.mean(h * h, axis=-1, keepdims=True)
    var = jnp.maximum(msq - mu * mu, 0.0)          # guard tiny negative rounding
    inv = jax.lax.rsqrt(var + _LN_EPS)
    return (h - mu) * (inv * gamma) + beta


def mlp_kernel(x_ref,
               w1_ref, p1_ref,
               w2_ref, p2_ref,
               w3_ref, b3_ref,
               out_ref):
    x = x_ref[...]                                             # (tm, L)
    p1 = p1_ref[...]                                           # (3, H) f32: bias, gamma, beta
    p2 = p2_ref[...]                                           # (3, H) f32

    # Block 1: Linear(L, H) + LayerNorm + ReLU  (Dropout = identity at eval).
    h = jnp.dot(x, w1_ref[...], preferred_element_type=jnp.float32)
    h = h + p1[0:1, :]
    h = _layernorm_f32(h, p1[1:2, :], p1[2:3, :])
    h = jnp.maximum(h, 0.0)

    # Block 2: Linear(H, H) + LayerNorm + ReLU.
    h = jnp.dot(h.astype(w2_ref.dtype), w2_ref[...],
                preferred_element_type=jnp.float32)
    h = h + p2[0:1, :]
    h = _layernorm_f32(h, p2[1:2, :], p2[2:3, :])
    h = jnp.maximum(h, 0.0)

    # Final projection: Linear(H, C_pad) -- lane-dense (C padded to 128).
    y = jnp.dot(h.astype(w3_ref.dtype), w3_ref[...],
                preferred_element_type=jnp.float32)
    out_ref[...] = (y + b3_ref[...]).astype(out_ref.dtype)     # (tm, C_pad)


@functools.partial(jax.jit, static_argnames=("tm", "use_bf16"))
def mlp_forward(x, w1, b1, g1, t1, w2, b2, g2, t2, w3, b3,
                *, tm=512, use_bf16=True):
    """x: (N, L) f32.  nn.Linear weights pre-transposed to (in, out).  -> (N, C) f32."""
    N, L = x.shape
    H = w1.shape[1]
    C = w3.shape[1]

    # ---- Lane-dense output: pad C to a multiple of 128 (sliced off below). --
    C_pad = _round_up(C, 128)
    if C_pad != C:
        w3 = jnp.pad(w3, ((0, 0), (0, C_pad - C)))
        b3 = jnp.pad(b3, ((0, 0), (0, C_pad - C)))

    # ---- Row-tile selection. ------------------------------------------------
    # bf16 packs 16 sublanes/vreg -> align the row tile to 16 there, 8 for f32.
    row_align = 16 if use_bf16 else 8
    if N > 128:
        # Split into >= 2 row tiles so both v7x TensorCores get a grid step.
        tm = min(tm, _round_up(pl.cdiv(N, 2), row_align))
    else:
        # Tiny / mem-bound N: one tile, avoid extra per-step overhead.
        tm = min(tm, _round_up(max(N, 1), row_align))
    tm = _round_up(tm, row_align)
    n_pad = _round_up(N, tm)
    if n_pad != N:
        x = jnp.pad(x, ((0, n_pad - N), (0, 0)))

    # ---- Matmul operand dtype (default bf16; LN / bias math stays f32). -----
    if use_bf16:
        x = x.astype(jnp.bfloat16)
        w1 = w1.astype(jnp.bfloat16)
        w2 = w2.astype(jnp.bfloat16)
        w3 = w3.astype(jnp.bfloat16)

    # Pack bias / gamma / beta per block into one (3, H) array: fewer tiny
    # VMEM blocks and fewer per-step DMA descriptors.
    p1 = jnp.concatenate([b1, g1, t1], axis=0).astype(jnp.float32)   # (3, H)
    p2 = jnp.concatenate([b2, g2, t2], axis=0).astype(jnp.float32)   # (3, H)
    b3 = b3.astype(jnp.float32)                                       # (1, C_pad)

    # ---- Explicit, generation-aware VMEM budget (cap 48 MiB for v7x). -------
    mxu_item = 2 if use_bf16 else 4
    est = ((L * H + H * H + H * C_pad) * mxu_item        # resident weights
           + (6 * H + C_pad) * 4                         # packed LN params / bias
           + 2 * tm * L * mxu_item                       # x row tile (double-buffered)
           + 2 * tm * C_pad * 4                          # output tile (double-buffered)
           + 3 * tm * max(H, C_pad) * 4)                 # live f32 intermediates
    vmem_limit = int(min(max(2 * est, 32 << 20), 48 << 20))

    grid = (n_pad // tm,)
    full2d = lambda shape: pl.BlockSpec(shape, lambda i: (0, 0))

    out = pl.pallas_call(
        mlp_kernel,
        out_shape=jax.ShapeDtypeStruct((n_pad, C_pad), jnp.float32),
        grid_spec=pl.GridSpec(
            grid=grid,
            in_specs=[
                pl.BlockSpec((tm, L), lambda i: (i, 0)),   # x row tile (streamed)
                full2d((L, H)),                            # W1   (resident)
                full2d((3, H)),                            # b1 / gamma1 / beta1
                full2d((H, H)),                            # W2   (resident)
                full2d((3, H)),                            # b2 / gamma2 / beta2
                full2d((H, C_pad)),                        # W3   (resident)
                full2d((1, C_pad)),                        # b3
            ],
            out_specs=pl.BlockSpec((tm, C_pad), lambda i: (i, 0)),
        ),
        compiler_params=pltpu.CompilerParams(
            dimension_semantics=("parallel",),
            vmem_limit_bytes=vmem_limit,
        ),
    )(x, w1, p1, w2, p2, w3, b3)

    return out[:N, :C]


def reference(x, w1, b1, g1, t1, w2, b2, g2, t2, w3, b3):
    hp = jax.lax.Precision.HIGHEST

    def ln(h, g, t):
        mu = jnp.mean(h, axis=-1, keepdims=True)
        var = jnp.mean((h - mu) ** 2, axis=-1, keepdims=True)
        return (h - mu) * jax.lax.rsqrt(var + _LN_EPS) * g + t

    h = jnp.maximum(ln(jnp.dot(x, w1, precision=hp) + b1, g1, t1), 0.0)
    h = jnp.maximum(ln(jnp.dot(h, w2, precision=hp) + b2, g2, t2), 0.0)
    return jnp.dot(h, w3, precision=hp) + b3


if __name__ == "__main__":
    # Small shapes consistent with the module: N tokens, input_dim L,
    # hidden_dim H, output_dim C.  N chosen so the grid has 2 row tiles
    # (megacore split) and C < 128 exercises the lane-dense output padding.
    N, L, H, C = 200, 64, 32, 8

    key = jax.random.PRNGKey(0)
    ks = jax.random.split(key, 8)

    x = jax.random.normal(ks[0], (N, L), dtype=jnp.float32)

    # nn.Linear weights stored transposed as (in, out); LayerNorm gamma/beta
    # perturbed so the affine path is actually exercised.
    w1 = 0.05 * jax.random.normal(ks[1], (L, H), dtype=jnp.float32)
    b1 = 0.05 * jax.random.normal(ks[2], (1, H), dtype=jnp.float32)
    g1 = jnp.ones((1, H), jnp.float32) + 0.1 * jax.random.normal(ks[3], (1, H))
    t1 = 0.05 * jax.random.normal(ks[4], (1, H), dtype=jnp.float32)

    w2 = 0.05 * jax.random.normal(ks[5], (H, H), dtype=jnp.float32)
    b2 = 0.05 * jax.random.normal(ks[6], (1, H), dtype=jnp.float32)
    g2 = jnp.ones((1, H), jnp.float32)
    t2 = jnp.zeros((1, H), jnp.float32)

    w3 = 0.05 * jax.random.normal(ks[7], (H, C), dtype=jnp.float32)
    b3 = jnp.zeros((1, C), jnp.float32)

    params = (w1, b1, g1, t1, w2, b2, g2, t2, w3, b3)

    ref = reference(x, *params)

    # f32-operand path: tight tolerance.
    out_f32 = jax.block_until_ready(mlp_forward(x, *params, use_bf16=False))
    assert out_f32.shape == (N, C)
    assert jnp.allclose(out_f32, ref, atol=1e-3, rtol=1e-3), "f32 mismatch vs reference"

    # Default perf path (bf16 MXU operands, f32 accumulation): loose tolerance.
    out_bf16 = jax.block_until_ready(mlp_forward(x, *params))
    assert out_bf16.shape == (N, C)
    assert jnp.allclose(out_bf16, ref, atol=1e-1, rtol=1e-1), "bf16 mismatch vs reference"

    print("KERNEL_OK")
</pallas_src>

<mosaic_0001>
module attributes {stable_mosaic.version = 11 : i64} {
  func.func @mlp_kernel(%arg0: i32, %arg1: memref<104x64xf32, #tpu.memory_space<vmem>>, %arg2: memref<64x32xf32, #tpu.memory_space<vmem>>, %arg3: memref<3x32xf32, #tpu.memory_space<vmem>>, %arg4: memref<32x32xf32, #tpu.memory_space<vmem>>, %arg5: memref<3x32xf32, #tpu.memory_space<vmem>>, %arg6: memref<32x128xf32, #tpu.memory_space<vmem>>, %arg7: memref<1x128xf32, #tpu.memory_space<vmem>>, %arg8: memref<104x128xf32, #tpu.memory_space<vmem>>) attributes {dimension_semantics = [#tpu.dimension_semantics<parallel>], iteration_bounds = array<i64: 2>, scalar_prefetch = 0 : i64, scratch_operands = 0 : i64, tpu.core_type = #tpu.core_type<tc>, window_params = [{transform_indices = @transform_0, window_bounds = array<i64: 104, 64>}, {pipeline_mode = #tpu.pipeline_mode<synchronous>, transform_indices = @transform_1, window_bounds = array<i64: 64, 32>}, {pipeline_mode = #tpu.pipeline_mode<synchronous>, transform_indices = @transform_2, window_bounds = array<i64: 3, 32>}, {pipeline_mode = #tpu.pipeline_mode<synchronous>, transform_indices = @transform_3, window_bounds = array<i64: 32, 32>}, {pipeline_mode = #tpu.pipeline_mode<synchronous>, transform_indices = @transform_4, window_bounds = array<i64: 3, 32>}, {pipeline_mode = #tpu.pipeline_mode<synchronous>, transform_indices = @transform_5, window_bounds = array<i64: 32, 128>}, {pipeline_mode = #tpu.pipeline_mode<synchronous>, transform_indices = @transform_6, window_bounds = array<i64: 1, 128>}, {transform_indices = @transform_7, window_bounds = array<i64: 104, 128>}]} {
    %c0 = arith.constant 0 : index
    %c0_0 = arith.constant 0 : index
    %0 = vector.load %arg1[%c0, %c0_0] : memref<104x64xf32, #tpu.memory_space<vmem>>, vector<104x64xf32>
    %c0_1 = arith.constant 0 : index
    %c0_2 = arith.constant 0 : index
    %1 = vector.load %arg3[%c0_1, %c0_2] : memref<3x32xf32, #tpu.memory_space<vmem>>, vector<3x32xf32>
    %c0_3 = arith.constant 0 : index
    %c0_4 = arith.constant 0 : index
    %2 = vector.load %arg5[%c0_3, %c0_4] : memref<3x32xf32, #tpu.memory_space<vmem>>, vector<3x32xf32>
    %c0_5 = arith.constant 0 : index
    %c0_6 = arith.constant 0 : index
    %3 = vector.load %arg2[%c0_5, %c0_6] : memref<64x32xf32, #tpu.memory_space<vmem>>, vector<64x32xf32>
    %cst = arith.constant dense<0.000000e+00> : vector<104x32xf32>
    %4 = tpu.matmul %0, %3, %cst {dimension_numbers = #tpu.dot_dimension_numbers<[1], [0], [0], [1], [0, 0, 1, 1], [], []>} : vector<104x64xf32>, vector<64x32xf32>, vector<104x32xf32> -> vector<104x32xf32>
    %5 = vector.extract_strided_slice %1 {offsets = [0, 0], sizes = [1, 32], strides = [1, 1]} : vector<3x32xf32> to vector<1x32xf32>
    %6 = vector.broadcast %5 : vector<1x32xf32> to vector<104x32xf32>
    %7 = arith.addf %4, %6 : vector<104x32xf32>
    %8 = vector.extract_strided_slice %1 {offsets = [1, 0], sizes = [1, 32], strides = [1, 1]} : vector<3x32xf32> to vector<1x32xf32>
    %9 = vector.extract_strided_slice %1 {offsets = [2, 0], sizes = [1, 32], strides = [1, 1]} : vector<3x32xf32> to vector<1x32xf32>
    %cst_7 = arith.constant dense<0.000000e+00> : vector<104xf32>
    %10 = vector.multi_reduction <add>, %7, %cst_7 [1] : vector<104x32xf32> to vector<104xf32>
    %11 = vector.shape_cast %10 : vector<104xf32> to vector<104x1xf32>
    %cst_8 = arith.constant 3.200000e+01 : f32
    %12 = vector.broadcast %cst_8 : f32 to vector<104x1xf32>
    %13 = arith.divf %11, %12 : vector<104x1xf32>
    %14 = arith.mulf %7, %7 : vector<104x32xf32>
    %cst_9 = arith.constant dense<0.000000e+00> : vector<104xf32>
    %15 = vector.multi_reduction <add>, %14, %cst_9 [1] : vector<104x32xf32> to vector<104xf32>
    %16 = vector.shape_cast %15 : vector<104xf32> to vector<104x1xf32>
    %cst_10 = arith.constant 3.200000e+01 : f32
    %17 = vector.broadcast %cst_10 : f32 to vector<104x1xf32>
    %18 = arith.divf %16, %17 : vector<104x1xf32>
    %19 = arith.mulf %13, %13 : vector<104x1xf32>
    %20 = arith.subf %18, %19 : vector<104x1xf32>
    %cst_11 = arith.constant 0.000000e+00 : f32
    %21 = vector.broadcast %cst_11 : f32 to vector<104x1xf32>
    %22 = arith.maximumf %20, %21 : vector<104x1xf32>
    %cst_12 = arith.constant 9.99999974E-6 : f32
    %23 = vector.broadcast %cst_12 : f32 to vector<104x1xf32>
    %24 = arith.addf %22, %23 : vector<104x1xf32>
    %25 = math.rsqrt %24 : vector<104x1xf32>
    %26 = vector.broadcast %13 : vector<104x1xf32> to vector<104x32xf32>
    %27 = arith.subf %7, %26 : vector<104x32xf32>
    %28 = vector.broadcast %25 : vector<104x1xf32> to vector<104x32xf32>
    %29 = vector.broadcast %8 : vector<1x32xf32> to vector<104x32xf32>
    %30 = arith.mulf %28, %29 : vector<104x32xf32>
    %31 = arith.mulf %27, %30 : vector<104x32xf32>
    %32 = vector.broadcast %9 : vector<1x32xf32> to vector<104x32xf32>
    %33 = arith.addf %31, %32 : vector<104x32xf32>
    %cst_13 = arith.constant 0.000000e+00 : f32
    %34 = vector.broadcast %cst_13 : f32 to vector<104x32xf32>
    %35 = arith.maximumf %33, %34 : vector<104x32xf32>
    %c0_14 = arith.constant 0 : index
    %c0_15 = arith.constant 0 : index
    %36 = vector.load %arg4[%c0_14, %c0_15] : memref<32x32xf32, #tpu.memory_space<vmem>>, vector<32x32xf32>
    %cst_16 = arith.constant dense<0.000000e+00> : vector<104x32xf32>
    %37 = tpu.matmul %35, %36, %cst_16 {dimension_numbers = #tpu.dot_dimension_numbers<[1], [0], [0], [1], [0, 0, 1, 1], [], []>} : vector<104x32xf32>, vector<32x32xf32>, vector<104x32xf32> -> vector<104x32xf32>
    %38 = vector.extract_strided_slice %2 {offsets = [0, 0], sizes = [1, 32], strides = [1, 1]} : vector<3x32xf32> to vector<1x32xf32>
    %39 = vector.broadcast %38 : vector<1x32xf32> to vector<104x32xf32>
    %40 = arith.addf %37, %39 : vector<104x32xf32>
    %41 = vector.extract_strided_slice %2 {offsets = [1, 0], sizes = [1, 32], strides = [1, 1]} : vector<3x32xf32> to vector<1x32xf32>
    %42 = vector.extract_strided_slice %2 {offsets = [2, 0], sizes = [1, 32], strides = [1, 1]} : vector<3x32xf32> to vector<1x32xf32>
    %cst_17 = arith.constant dense<0.000000e+00> : vector<104xf32>
    %43 = vector.multi_reduction <add>, %40, %cst_17 [1] : vector<104x32xf32> to vector<104xf32>
    %44 = vector.shape_cast %43 : vector<104xf32> to vector<104x1xf32>
    %cst_18 = arith.constant 3.200000e+01 : f32
    %45 = vector.broadcast %cst_18 : f32 to vector<104x1xf32>
    %46 = arith.divf %44, %45 : vector<104x1xf32>
    %47 = arith.mulf %40, %40 : vector<104x32xf32>
    %cst_19 = arith.constant dense<0.000000e+00> : vector<104xf32>
    %48 = vector.multi_reduction <add>, %47, %cst_19 [1] : vector<104x32xf32> to vector<104xf32>
    %49 = vector.shape_cast %48 : vector<104xf32> to vector<104x1xf32>
    %cst_20 = arith.constant 3.200000e+01 : f32
    %50 = vector.broadcast %cst_20 : f32 to vector<104x1xf32>
    %51 = arith.divf %49, %50 : vector<104x1xf32>
    %52 = arith.mulf %46, %46 : vector<104x1xf32>
    %53 = arith.subf %51, %52 : vector<104x1xf32>
    %cst_21 = arith.constant 0.000000e+00 : f32
    %54 = vector.broadcast %cst_21 : f32 to vector<104x1xf32>
    %55 = arith.maximumf %53, %54 : vector<104x1xf32>
    %cst_22 = arith.constant 9.99999974E-6 : f32
    %56 = vector.broadcast %cst_22 : f32 to vector<104x1xf32>
    %57 = arith.addf %55, %56 : vector<104x1xf32>
    %58 = math.rsqrt %57 : vector<104x1xf32>
    %59 = vector.broadcast %46 : vector<104x1xf32> to vector<104x32xf32>
    %60 = arith.subf %40, %59 : vector<104x32xf32>
    %61 = vector.broadcast %58 : vector<104x1xf32> to vector<104x32xf32>
    %62 = vector.broadcast %41 : vector<1x32xf32> to vector<104x32xf32>
    %63 = arith.mulf %61, %62 : vector<104x32xf32>
    %64 = arith.mulf %60, %63 : vector<104x32xf32>
    %65 = vector.broadcast %42 : vector<1x32xf32> to vector<104x32xf32>
    %66 = arith.addf %64, %65 : vector<104x32xf32>
    %cst_23 = arith.constant 0.000000e+00 : f32
    %67 = vector.broadcast %cst_23 : f32 to vector<104x32xf32>
    %68 = arith.maximumf %66, %67 : vector<104x32xf32>
    %c0_24 = arith.constant 0 : index
    %c0_25 = arith.constant 0 : index
    %69 = vector.load %arg6[%c0_24, %c0_25] : memref<32x128xf32, #tpu.memory_space<vmem>>, vector<32x128xf32>
    %cst_26 = arith.constant dense<0.000000e+00> : vector<104x128xf32>
    %70 = tpu.matmul %68, %69, %cst_26 {dimension_numbers = #tpu.dot_dimension_numbers<[1], [0], [0], [1], [0, 0, 1, 1], [], []>} : vector<104x32xf32>, vector<32x128xf32>, vector<104x128xf32> -> vector<104x128xf32>
    %c0_27 = arith.constant 0 : index
    %c0_28 = arith.constant 0 : index
    %71 = vector.load %arg7[%c0_27, %c0_28] : memref<1x128xf32, #tpu.memory_space<vmem>>, vector<1x128xf32>
    %72 = vector.broadcast %71 : vector<1x128xf32> to vector<104x128xf32>
    %73 = arith.addf %70, %72 : vector<104x128xf32>
    %c0_29 = arith.constant 0 : index
    %c0_30 = arith.constant 0 : index
    %74 = vector.load %arg8[%c0_29, %c0_30] : memref<104x128xf32, #tpu.memory_space<vmem>>, vector<104x128xf32>
    tpu.vector_store %arg8[%c0_29, %c0_30], %73 {strides = array<i32>} : memref<104x128xf32, #tpu.memory_space<vmem>>, vector<104x128xf32>,
    return
  }
  func.func @transform_0(%arg0: i32) -> (i32, i32) {
    %c0_i32 = arith.constant 0 : i32
    %c0_i32_0 = arith.constant 0 : i32
    return %arg0, %c0_i32 : i32, i32
  }
  func.func @transform_1(%arg0: i32) -> (i32, i32) {
    %c0_i32 = arith.constant 0 : i32
    %c0_i32_0 = arith.constant 0 : i32
    %c0_i32_1 = arith.constant 0 : i32
    return %c0_i32, %c0_i32_0 : i32, i32
  }
  func.func @transform_2(%arg0: i32) -> (i32, i32) {
    %c0_i32 = arith.constant 0 : i32
    %c0_i32_0 = arith.constant 0 : i32
    %c0_i32_1 = arith.constant 0 : i32
    return %c0_i32, %c0_i32_0 : i32, i32
  }
  func.func @transform_3(%arg0: i32) -> (i32, i32) {
    %c0_i32 = arith.constant 0 : i32
    %c0_i32_0 = arith.constant 0 : i32
    %c0_i32_1 = arith.constant 0 : i32
    return %c0_i32, %c0_i32_0 : i32, i32
  }
  func.func @transform_4(%arg0: i32) -> (i32, i32) {
    %c0_i32 = arith.constant 0 : i32
    %c0_i32_0 = arith.constant 0 : i32
    %c0_i32_1 = arith.constant 0 : i32
    return %c0_i32, %c0_i32_0 : i32, i32
  }
  func.func @transform_5(%arg0: i32) -> (i32, i32) {
    %c0_i32 = arith.constant 0 : i32
    %c0_i32_0 = arith.constant 0 : i32
    %c0_i32_1 = arith.constant 0 : i32
    return %c0_i32, %c0_i32_0 : i32, i32
  }
  func.func @transform_6(%arg0: i32) -> (i32, i32) {
    %c0_i32 = arith.constant 0 : i32
    %c0_i32_0 = arith.constant 0 : i32
    %c0_i32_1 = arith.constant 0 : i32
    return %c0_i32, %c0_i32_0 : i32, i32
  }
  func.func @transform_7(%arg0: i32) -> (i32, i32) {
    %c0_i32 = arith.constant 0 : i32
    %c0_i32_0 = arith.constant 0 : i32
    return %arg0, %c0_i32 : i32, i32
  }
}

</mosaic_0001>

<bundles_post_ra>
// kernel: mlp_forward.1
= control target key start
LH: loop header
LB: loop body
LE: loop exit
PB: predicated region body
PF: predicated region fallthrough
CT: control target
= control target key end

     0   :  { %s1790_s24 = smov 0   ;;  %s2493_s0 = inlined_call_operand.vmem [shape: f32[208,64], index: 0, kind: input, shape index: {}]   ;;  %s2494_s1 = inlined_call_operand.vmem [shape: f32[64,32], index: 1, kind: input, shape index: {}]   ;;  %s2495_s2 = inlined_call_operand.vmem [shape: f32[3,32], index: 2, kind: input, shape index: {}]   ;;  %s2496_s3 = inlined_call_operand.vmem [shape: f32[32,32], index: 3, kind: input, shape index: {}]   ;;  %s2497_s4 = inlined_call_operand.vmem [shape: f32[3,32], index: 4, kind: input, shape index: {}]   ;;  %s2498_s5 = inlined_call_operand.vmem [shape: f32[32,128], index: 5, kind: input, shape index: {}]   ;;  %s2499_s6 = inlined_call_operand.vmem [shape: f32[1,128], index: 6, kind: input, shape index: {}]   ;;  %s2500_s7 = inlined_call_operand.vmem [shape: f32[208,128], index: 7, kind: output, shape index: {}]  }
   0x1 LB: > { %s1417_s25 = sadd.s32 4294967295, %s1746_s24   ;;  %p1421_p0 = scmp.ge.s32.totalorder %s1746_s24, 1  ;;  %s1746_s24 = sphi %s1790_s24, %s17_s24  }
   0x2   : > { %p238_p1 = scmp.lt.s32.totalorder %s1746_s24, 3 }
   0x4   : > { %p239_p2 = pnand %p1421_p0, %p238_p1 }
   0x5   : > { %s270_s28 = smul.u32 (!%p239_p2), 13, %s1417_s25 }
   0x6   : > { %242 = sbr.rel (%p239_p2) target bundleno = 1008 (0x3f0), region = 48 }
   0x7   : > { %p271_p3 = scmp.lt.s32.totalorder (!%p239_p2), %s270_s28, 25 }
   0xb   : > { %v304_v0 = vld [vmem:[%s2494_s1 + $0x38] sm:$0xff]  ;;  %v1748_v1 = vmov 0.0   ;;  %v303_v2 = vld [vmem:[%s2494_s1 + $0x30] sm:$0xff]  ;;  %vm1749_vm0 = vmmov 0   ;;  %v302_v3 = vld [vmem:[%s2494_s1 + $0x28] sm:$0xff]  ;;  %s2502_s28 = smov (!%p271_p3, %s270_s28), 25  ;;  %v305_v24 = vlaneseq }
   0xc   : > { %1521 = vmatprep.subr.mxu0 %v1748_v1  ;;  %1537 = vmatprep.mubr.msk.f32.mxu0 %vm1749_vm0, %v1748_v1  ;;  %v301_v4 = vld [vmem:[%s2494_s1 + $0x20] sm:$0xff]  ;;  %v300_v5 = vld [vmem:[%s2494_s1 + $0x18] sm:$0xff]  ;;  %s1422_s14 = sshll.u32 %s2502_s28, 3  ;;  %v299_v6 = vld [vmem:[%s2494_s1 + $0x10] sm:$0xff]  ;;  %vm309_vm1 = vcmask 523264   ;;  %vm479_vm2 = vcmask 261120  }
   0xd   : > { %1522 = vmatpush3.msra.mxu0 %v304_v0  ;;  %1670 = vmatprep.subr.mxu1 %v1748_v1  ;;  %v298_v7 = vld [vmem:[%s2494_s1 + $0x8] sm:$0xff]  ;;  %s1838_s21 = scalar_lea.vmem %s2493_s0, %s1422_s14  ;;  %v297_v8 = vld [vmem:[%s2494_s1] sm:$0xff]  ;;  %v739_v22 = vld [vmem:[%s2496_s3 + $0x18] sm:$0xff]  ;;  %v1908_v25 = vshrl.u32 %v305_v24, 7  ;;  %s2475_s30 = scalar_lea.vmem %s2500_s7, %s1422_s14 }
   0xe   : > { %1523 = vmatprep.subr.mxu0 %v1748_v1  ;;  %1599 = vmatprep.mubr.msk.f32.mxu1 %vm1749_vm0, %v1748_v1  ;;  %v282_v9 = vld [vmem:[%s1838_s21] sm:$0xff]  ;;  %v283_v10 = vld [vmem:[%s1838_s21 + $0x8] sm:$0xff]  ;;  %v284_v11 = vld [vmem:[%s1838_s21 + $0x10] sm:$0xff] }
   0xf   : > { %1524 = vmatpush3.msra.mxu0 %v303_v2  ;;  %v285_v12 = vld [vmem:[%s1838_s21 + $0x18] sm:$0xff]  ;;  %v286_v13 = vld [vmem:[%s1838_s21 + $0x20] sm:$0xff]  ;;  %v287_v14 = vld [vmem:[%s1838_s21 + $0x28] sm:$0xff]  ;;  %1674 = vmatpush3.msra.mxu1 %v739_v22  ;;  %v307_v26 = vsub.s32 0, %v1908_v25 }
  0x10   : > { %1525 = vmatprep.subr.mxu0 %v1748_v1  ;;  %v288_v15 = vld [vmem:[%s1838_s21 + $0x30] sm:$0xff]  ;;  %v289_v16 = vld [vmem:[%s1838_s21 + $0x38] sm:$0xff]  ;;  %v290_v17 = vld [vmem:[%s1838_s21 + $0x40] sm:$0xff]  ;;  %1671 = vmatprep.subr.mxu1 %v1748_v1 }
  0x11   : > { %1526 = vmatpush3.msra.mxu0 %v302_v3  ;;  %v291_v18 = vld [vmem:[%s1838_s21 + $0x48] sm:$0xff]  ;;  %v292_v19 = vld [vmem:[%s1838_s21 + $0x50] sm:$0xff]  ;;  %v293_v20 = vld [vmem:[%s1838_s21 + $0x58] sm:$0xff] }
  0x12   : > { %1527 = vmatprep.subr.mxu0 %v1748_v1  ;;  %v294_v21 = vld [vmem:[%s1838_s21 + $0x60] sm:$0xff]  ;;  %v738_v23 = vld [vmem:[%s2496_s3 + $0x10] sm:$0xff] }
  0x13   : > { %1528 = vmatpush3.msra.mxu0 %v301_v4  ;;  %1675 = vmatpush3.msra.mxu1 %v738_v23  ;;  %v1914_v27 = vld [vmem:[%s2495_s2] sm:$0x7] }
  0x14   : > { %1529 = vmatprep.subr.mxu0 %v1748_v1  ;;  %1672 = vmatprep.subr.mxu1 %v1748_v1  ;;  %v1919_v28 = vrot.slane %v1914_v27, %v307_v26 }
  0x15   : > { %1530 = vmatpush3.msra.mxu0 %v300_v5 }
  0x16   : > { %1531 = vmatprep.subr.mxu0 %v1748_v1 }
  0x17   : > { %1532 = vmatpush3.msra.mxu0 %v299_v6 }
  0x18   : > { %1533 = vmatprep.subr.mxu0 %v1748_v1 }
  0x19   : > { %1534 = vmatpush3.msra.mxu0 %v298_v7 }
  0x1a   : > { %1535 = vmatprep.subr.mxu0 %v1748_v1 }
  0x1b   : > { %1536 = vmatpush3.msra.mxu0 %v297_v8 }
  0x1c   : > { %1538 = vmatmul.mubr.msk.f32.vlgmr.msra.gmra.mxu0 %vm309_vm1, %v282_v9  ;;  %1576 = vmatprep.subr.mxu0 %v1748_v1 }
  0x1d   : > { %1540 = vmatprep.mubr.msk.f32.mxu0 %vm1749_vm0, %v1748_v1  ;;  %1577 = vmatpush3.msra.mxu0 %v739_v22 }
  0x1e   : > { %1578 = vmatprep.subr.mxu0 %v1748_v1 }
  0x1f   : > { %1579 = vmatpush3.msra.mxu0 %v738_v23 }
  0x20   : > { %1541 = vmatmul.mubr.msk.f32.gmra.mxu0 %vm309_vm1, %v283_v10  ;;  %1580 = vmatprep.subr.mxu0 %v1748_v1 }
  0x21   : > { %1543 = vmatprep.mubr.msk.f32.mxu0 %vm1749_vm0, %v1748_v1 }
  0x24   : > { %1544 = vmatmul.mubr.msk.f32.gmra.mxu0 %vm309_vm1, %v284_v11 }
  0x25   : > { %1546 = vmatprep.mubr.msk.f32.mxu0 %vm1749_vm0, %v1748_v1 }
  0x28   : > { %1547 = vmatmul.mubr.msk.f32.gmra.mxu0 %vm309_vm1, %v285_v12 }
  0x29   : > { %1549 = vmatprep.mubr.msk.f32.mxu0 %vm1749_vm0, %v1748_v1 }
  0x2c   : > { %1550 = vmatmul.mubr.msk.f32.gmra.mxu0 %vm309_vm1, %v286_v13 }
  0x2d   : > { %1552 = vmatprep.mubr.msk.f32.mxu0 %vm1749_vm0, %v1748_v1 }
  0x30   : > { %1553 = vmatmul.mubr.msk.f32.gmra.mxu0 %vm309_vm1, %v287_v14 }
  0x31   : > { %1555 = vmatprep.mubr.msk.f32.mxu0 %vm1749_vm0, %v1748_v1 }
  0x34   : > { %1556 = vmatmul.mubr.msk.f32.gmra.mxu0 %vm309_vm1, %v288_v15 }
  0x35   : > { %1558 = vmatprep.mubr.msk.f32.mxu0 %vm1749_vm0, %v1748_v1 }
  0x38   : > { %1559 = vmatmul.mubr.msk.f32.gmra.mxu0 %vm309_vm1, %v289_v16 }
  0x39   : > { %1561 = vmatprep.mubr.msk.f32.mxu0 %vm1749_vm0, %v1748_v1 }
  0x3c   : > { %1562 = vmatmul.mubr.msk.f32.gmra.mxu0 %vm309_vm1, %v290_v17 }
  0x3d   : > { %1564 = vmatprep.mubr.msk.f32.mxu0 %vm1749_vm0, %v1748_v1 }
  0x40   : > { %1565 = vmatmul.mubr.msk.f32.gmra.mxu0 %vm309_vm1, %v291_v18 }
  0x41   : > { %1567 = vmatprep.mubr.msk.f32.mxu0 %vm1749_vm0, %v1748_v1 }
  0x44   : > { %1568 = vmatmul.mubr.msk.f32.gmra.mxu0 %vm309_vm1, %v292_v19 }
  0x45   : > { %1570 = vmatprep.mubr.msk.f32.mxu0 %vm1749_vm0, %v1748_v1 }
  0x48   : > { %1571 = vmatmul.mubr.msk.f32.gmra.mxu0 %vm309_vm1, %v293_v20 }
  0x49   : > { %1573 = vmatprep.mubr.msk.f32.mxu0 %vm1749_vm0, %v1748_v1 }
  0x4c   : > { %1574 = vmatmul.mubr.msk.f32.gmra.mxu0 %vm309_vm1, %v294_v21 }
  0x4d   : > { %1584 = vmatprep.mubr.msk.f32.mxu0 %vm1749_vm0, %v1748_v1 }
  0xdc   : > { %v415_v29 = vpop.f32.mrf.mxu0 }
  0xdd   : > { %v1922_v30 = vadd.f32 %v415_v29, %v1919_v28 }
  0xde   : > { %v1539_v31 = vpop.f32.mrf.mxu0 }
  0xdf   : > { %v480_v32 = vsel %vm479_vm2, %v1922_v30, 0.0  ;;  %v533_v33 = vmul.f32 %v1922_v30, %v1922_v30  ;;  %v737_v31 = vld [vmem:[%s2496_s3 + $0x8] sm:$0xff] }
  0xe0   : > { %481 = vadd.xlane.f32.xlu0 %v480_v32  ;;  %v420_v34 = vpop.f32.mrf.mxu0  ;;  %1581 = vmatpush3.msra.mxu0 %v737_v31 }
  0xe1   : > { %v1929_v35 = vadd.f32 %v420_v34, %v1919_v28  ;;  %v546_v37 = vsel %vm479_vm2, %v533_v33, 0.0  ;;  %1676 = vmatpush3.msra.mxu1 %v737_v31  ;;  %1582 = vmatprep.subr.mxu0 %v1748_v1  ;;  %v678_v31 = vsub.s32 1, %v1908_v25 }
  0xe2   : > { %v1542_v36 = vpop.f32.mrf.mxu0  ;;  %1673 = vmatprep.subr.mxu1 %v1748_v1 }
  0xe3   : > { %v483_v38 = vsel %vm479_vm2, %v1929_v35, 0.0  ;;  %v534_v39 = vmul.f32 %v1929_v35, %v1929_v35  ;;  %v736_v36 = vld [vmem:[%s2496_s3] sm:$0xff] }
  0xe4   : > { %547 = vadd.xlane.f32.xlu0 %v546_v37  ;;  %484 = vadd.xlane.f32.xlu1 %v483_v38  ;;  %v425_v40 = vpop.f32.mrf.mxu0 }
  0xe5   : > { %v1937_v41 = vadd.f32 %v425_v40, %v1919_v28  ;;  %v549_v43 = vsel %vm479_vm2, %v534_v39, 0.0  ;;  %1583 = vmatpush3.msra.mxu0 %v736_v36  ;;  %1677 = vmatpush3.msra.mxu1 %v736_v36 }
  0xe6   : > { %v1545_v42 = vpop.f32.mrf.mxu0  ;;  %1623 = vmatprep.subr.mxu1 %v1748_v1 }
  0xe7   : > { %v486_v44 = vsel %vm479_vm2, %v1937_v41, 0.0  ;;  %v535_v45 = vmul.f32 %v1937_v41, %v1937_v41 }
  0xe8   : > { %550 = vadd.xlane.f32.xlu1 %v549_v43  ;;  %487 = vadd.xlane.f32.xlu0 %v486_v44  ;;  %v430_v46 = vpop.f32.mrf.mxu0 }
  0xe9   : > { %v1945_v47 = vadd.f32 %v430_v46, %v1919_v28  ;;  %v552_v48 = vsel %vm479_vm2, %v535_v45, 0.0 }
  0xea   : > { %v1548_v49 = vpop.f32.mrf.mxu0 }
  0xeb   : > { %v489_v50 = vsel %vm479_vm2, %v1945_v47, 0.0  ;;  %v536_v51 = vmul.f32 %v1945_v47, %v1945_v47 }
  0xec   : > { %553 = vadd.xlane.f32.xlu1 %v552_v48  ;;  %490 = vadd.xlane.f32.xlu0 %v489_v50  ;;  %v435_v52 = vpop.f32.mrf.mxu0 }
  0xed   : > { %v1953_v53 = vadd.f32 %v435_v52, %v1919_v28  ;;  %v555_v54 = vsel %vm479_vm2, %v536_v51, 0.0 }
  0xee   : > { %v1551_v55 = vpop.f32.mrf.mxu0 }
  0xef   : > { %v492_v56 = vsel %vm479_vm2, %v1953_v53, 0.0  ;;  %v537_v57 = vmul.f32 %v1953_v53, %v1953_v53 }
  0xf0   : > { %556 = vadd.xlane.f32.xlu1 %v555_v54  ;;  %493 = vadd.xlane.f32.xlu0 %v492_v56  ;;  %v440_v58 = vpop.f32.mrf.mxu0 }
  0xf1   : > { %v1961_v59 = vadd.f32 %v440_v58, %v1919_v28  ;;  %v558_v60 = vsel %vm479_vm2, %v537_v57, 0.0 }
  0xf2   : > { %v1554_v61 = vpop.f32.mrf.mxu0 }
  0xf3   : > { %v495_v62 = vsel %vm479_vm2, %v1961_v59, 0.0  ;;  %v538_v63 = vmul.f32 %v1961_v59, %v1961_v59 }
  0xf4   : > { %559 = vadd.xlane.f32.xlu1 %v558_v60  ;;  %496 = vadd.xlane.f32.xlu0 %v495_v62  ;;  %v445_v0 = vpop.f32.mrf.mxu0 }
  0xf5   : > { %v1969_v2 = vadd.f32 %v445_v0, %v1919_v28  ;;  %v561_v3 = vsel %vm479_vm2, %v538_v63, 0.0 }
  0xf6   : > { %v1557_v4 = vpop.f32.mrf.mxu0 }
  0xf7   : > { %v498_v5 = vsel %vm479_vm2, %v1969_v2, 0.0  ;;  %v539_v6 = vmul.f32 %v1969_v2, %v1969_v2 }
  0xf8   : > { %562 = vadd.xlane.f32.xlu1 %v561_v3  ;;  %499 = vadd.xlane.f32.xlu0 %v498_v5  ;;  %v450_v7 = vpop.f32.mrf.mxu0 }
  0xf9   : > { %v1977_v8 = vadd.f32 %v450_v7, %v1919_v28  ;;  %v564_v9 = vsel %vm479_vm2, %v539_v6, 0.0 }
  0xfa   : > { %v1560_v10 = vpop.f32.mrf.mxu0 }
  0xfb   : > { %v501_v11 = vsel %vm479_vm2, %v1977_v8, 0.0  ;;  %v540_v12 = vmul.f32 %v1977_v8, %v1977_v8 }
  0xfc   : > { %565 = vadd.xlane.f32.xlu1 %v564_v9  ;;  %502 = vadd.xlane.f32.xlu0 %v501_v11  ;;  %v455_v13 = vpop.f32.mrf.mxu0 }
  0xfd   : > { %v1985_v14 = vadd.f32 %v455_v13, %v1919_v28  ;;  %v567_v15 = vsel %vm479_vm2, %v540_v12, 0.0 }
  0xfe   : > { %v1563_v16 = vpop.f32.mrf.mxu0 }
  0xff   : > { %v504_v17 = vsel %vm479_vm2, %v1985_v14, 0.0  ;;  %v541_v18 = vmul.f32 %v1985_v14, %v1985_v14 }
 0x100   : > { %568 = vadd.xlane.f32.xlu1 %v567_v15  ;;  %505 = vadd.xlane.f32.xlu0 %v504_v17  ;;  %v460_v19 = vpop.f32.mrf.mxu0 }
 0x101   : > { %v1993_v20 = vadd.f32 %v460_v19, %v1919_v28  ;;  %v570_v21 = vsel %vm479_vm2, %v541_v18, 0.0 }
 0x102   : > { %v1566_v22 = vpop.f32.mrf.mxu0 }
 0x103   : > { %v507_v23 = vsel %vm479_vm2, %v1993_v20, 0.0  ;;  %v542_v24 = vmul.f32 %v1993_v20, %v1993_v20 }
 0x104   : > { %571 = vadd.xlane.f32.xlu1 %v570_v21  ;;  %508 = vadd.xlane.f32.xlu0 %v507_v23  ;;  %v465_v29 = vpop.f32.mrf.mxu0 }
 0x105   : > { %v2004_v32 = vadd.f32 %v465_v29, %v1919_v28  ;;  %v573_v33 = vsel %vm479_vm2, %v542_v24, 0.0 }
 0x106   : > { %v1569_v34 = vpop.f32.mrf.mxu0 }
 0x107   : > { %v510_v37 = vsel %vm479_vm2, %v2004_v32, 0.0  ;;  %v543_v38 = vmul.f32 %v2004_v32, %v2004_v32 }
 0x108   : > { %574 = vadd.xlane.f32.xlu1 %v573_v33  ;;  %511 = vadd.xlane.f32.xlu0 %v510_v37  ;;  %v470_v39 = vpop.f32.mrf.mxu0 }
 0x109   : > { %v2017_v40 = vadd.f32 %v470_v39, %v1919_v28  ;;  %v576_v42 = vsel %vm479_vm2, %v543_v38, 0.0 }
 0x10a   : > { %v1572_v43 = vpop.f32.mrf.mxu0 }
 0x10b   : > { %v513_v44 = vsel %vm479_vm2, %v2017_v40, 0.0  ;;  %v544_v45 = vmul.f32 %v2017_v40, %v2017_v40 }
 0x10c   : > { %577 = vadd.xlane.f32.xlu1 %v576_v42  ;;  %514 = vadd.xlane.f32.xlu0 %v513_v44  ;;  %v475_v46 = vpop.f32.mrf.mxu0  ;;  %v2060_v44 = vrot.slane %v1914_v27, %v678_v31 }
 0x10d   : > { %v2026_v48 = vadd.f32 %v475_v46, %v1919_v28  ;;  %v579_v49 = vsel %vm479_vm2, %v544_v45, 0.0 }
 0x10e   : > { %v1575_v50 = vpop.f32.mrf.mxu0 }
 0x10f   : > { %v516_v51 = vsel %vm479_vm2, %v2026_v48, 0.0  ;;  %v545_v52 = vmul.f32 %v2026_v48, %v2026_v48  ;;  %v708_v50 = vsub.s32 2, %v1908_v25 }
 0x110   : > { %580 = vadd.xlane.f32.xlu1 %v579_v49  ;;  %517 = vadd.xlane.f32.xlu0 %v516_v51 }
 0x111   : > { %v582_v54 = vsel %vm479_vm2, %v545_v52, 0.0 }
 0x114   : > { %583 = vadd.xlane.f32.xlu1 %v582_v54 }
 0x169   : > { %v482_v55 = vpop.xlane.xlu0 %481 }
 0x16a   : > { %v2034_v56 = vmul.f32 0.03125, %v482_v55 }
 0x16c   : > { %v598_v58 = vmul.f32 %v2034_v56, %v2034_v56 }
 0x16d   : > { %v548_v57 = vpop.xlane.xlu0 %547  ;;  %v485_v28 = vpop.xlane.xlu1 %484 }
 0x16e   : > { %v585_v60 = vmul.f32 0.03125, %v548_v57  ;;  %v2038_v61 = vmul.f32 0.03125, %v485_v28 }
 0x170   : > { %v611_v62 = vsub.f32 %v585_v60, %v598_v58  ;;  %v599_v4 = vmul.f32 %v2038_v61, %v2038_v61 }
 0x171   : > { %v551_v63 = vpop.xlane.xlu1 %550  ;;  %v488_v0 = vpop.xlane.xlu0 %487 }
 0x172   : > { %v624_v3 = vmax.f32 %v611_v62, 0.0  ;;  %v586_v5 = vmul.f32 0.03125, %v551_v63  ;;  %v2042_v6 = vmul.f32 0.03125, %v488_v0  ;;  %v2073_v0 = vrot.slane %v1914_v27, %v708_v50 }
 0x173   : > { %v664_v27 = vsub.f32 %v1929_v35, %v2038_v61 }
 0x174   : > { %v637_v7 = vadd.f32 1e-05, %v624_v3  ;;  %v612_v9 = vsub.f32 %v586_v5, %v599_v4  ;;  %v600_v10 = vmul.f32 %v2042_v6, %v2042_v6  ;;  %v663_v3 = vsub.f32 %v1922_v30, %v2034_v56 }
 0x175   : > { %v554_v11 = vpop.xlane.xlu1 %553  ;;  %v491_v12 = vpop.xlane.xlu0 %490  ;;  %v665_v35 = vsub.f32 %v1937_v41, %v2042_v6 }
 0x176   : > { %1688 = vrsqrt.f32 %v637_v7  ;;  %v625_v13 = vmax.f32 %v612_v9, 0.0  ;;  %v587_v15 = vmul.f32 0.03125, %v554_v11  ;;  %v2046_v16 = vmul.f32 0.03125, %v491_v12 }
 0x178   : > { %v638_v17 = vadd.f32 1e-05, %v625_v13  ;;  %v613_v18 = vsub.f32 %v587_v15, %v600_v10  ;;  %v601_v19 = vmul.f32 %v2046_v16, %v2046_v16 }
 0x179   : > { %v557_v21 = vpop.xlane.xlu1 %556  ;;  %v494_v22 = vpop.xlane.xlu0 %493 }
 0x17a   : > { %1690 = vrsqrt.f32 %v638_v17  ;;  %v626_v23 = vmax.f32 %v613_v18, 0.0  ;;  %v588_v24 = vmul.f32 0.03125, %v557_v21  ;;  %v2050_v29 = vmul.f32 0.03125, %v494_v22 }
 0x17c   : > { %v639_v33 = vadd.f32 1e-05, %v626_v23  ;;  %v614_v34 = vsub.f32 %v588_v24, %v601_v19  ;;  %v602_v36 = vmul.f32 %v2050_v29, %v2050_v29 }
 0x17d   : > { %v560_v37 = vpop.xlane.xlu1 %559  ;;  %v497_v38 = vpop.xlane.xlu0 %496 }
 0x17e   : > { %1692 = vrsqrt.f32 %v639_v33  ;;  %v627_v39 = vmax.f32 %v614_v34, 0.0  ;;  %v589_v42 = vmul.f32 0.03125, %v560_v37  ;;  %v2055_v43 = vmul.f32 0.03125, %v497_v38 }
 0x180   : > { %v640_v45 = vadd.f32 1e-05, %v627_v39  ;;  %v615_v46 = vsub.f32 %v589_v42, %v602_v36  ;;  %v603_v49 = vmul.f32 %v2055_v43, %v2055_v43 }
 0x181   : > { %v563_v51 = vpop.xlane.xlu1 %562  ;;  %v500_v52 = vpop.xlane.xlu0 %499 }
 0x182   : > { %1694 = vrsqrt.f32 %v640_v45  ;;  %v628_v54 = vmax.f32 %v615_v46, 0.0  ;;  %v590_v55 = vmul.f32 0.03125, %v563_v51  ;;  %v2065_v57 = vmul.f32 0.03125, %v500_v52 }
 0x183   : > { %v1689_v28 = vpop.eup %1688 }
 0x184   : > { %v680_v58 = vmul.f32 %v1689_v28, %v2060_v44  ;;  %v641_v60 = vadd.f32 1e-05, %v628_v54  ;;  %v616_v62 = vsub.f32 %v590_v55, %v603_v49  ;;  %v604_v63 = vmul.f32 %v2065_v57, %v2065_v57 }
 0x185   : > { %v566_v4 = vpop.xlane.xlu1 %565  ;;  %v503_v5 = vpop.xlane.xlu0 %502 }
 0x186   : > { %1696 = vrsqrt.f32 %v641_v60  ;;  %v629_v7 = vmax.f32 %v616_v62, 0.0  ;;  %v591_v9 = vmul.f32 0.03125, %v566_v4  ;;  %v2077_v10 = vmul.f32 0.03125, %v503_v5 }
 0x187   : > { %v1691_v11 = vpop.eup %1690  ;;  %v693_v12 = vmul.f32 %v680_v58, %v663_v3  ;;  %v666_v58 = vsub.f32 %v1945_v47, %v2046_v16 }
 0x188   : > { %v642_v13 = vadd.f32 1e-05, %v629_v7  ;;  %v617_v15 = vsub.f32 %v591_v9, %v604_v63  ;;  %v605_v17 = vmul.f32 %v2077_v10, %v2077_v10  ;;  %v681_v56 = vmul.f32 %v1691_v11, %v2060_v44 }
 0x189   : > { %v569_v18 = vpop.xlane.xlu1 %568  ;;  %v506_v19 = vpop.xlane.xlu0 %505  ;;  %v710_v30 = vadd.f32 %v2073_v0, %v693_v12 }
 0x18a   : > { %1698 = vrsqrt.f32 %v642_v13  ;;  %v630_v21 = vmax.f32 %v617_v15, 0.0  ;;  %v592_v22 = vmul.f32 0.03125, %v569_v18  ;;  %v2085_v23 = vmul.f32 0.03125, %v506_v19 }
 0x18b   : > { %v1693_v24 = vpop.eup %1692  ;;  %v723_v33 = vmax.f32 %v710_v30, 0.0  ;;  %v694_v34 = vmul.f32 %v681_v56, %v664_v27  ;;  %v667_v15 = vsub.f32 %v1953_v53, %v2050_v29 }
 0x18c   : > { %v643_v36 = vadd.f32 1e-05, %v630_v21  ;;  %v618_v37 = vsub.f32 %v592_v22, %v605_v17  ;;  %v606_v38 = vmul.f32 %v2085_v23, %v2085_v23  ;;  %v682_v45 = vmul.f32 %v1693_v24, %v2060_v44 }
 0x18d   : > { %1585 = vmatmul.mubr.msk.f32.vlgmr.msra.gmra.mxu0 %vm479_vm2, %v723_v33  ;;  %v572_v61 = vpop.xlane.xlu1 %571  ;;  %v509_v39 = vpop.xlane.xlu0 %508  ;;  %v711_v42 = vadd.f32 %v2073_v0, %v694_v34 }
 0x18e   : > { %1700 = vrsqrt.f32 %v643_v36  ;;  %v631_v46 = vmax.f32 %v618_v37, 0.0  ;;  %v593_v49 = vmul.f32 0.03125, %v572_v61  ;;  %v2094_v51 = vmul.f32 0.03125, %v509_v39  ;;  %1587 = vmatprep.mubr.msk.f32.mxu0 %vm1749_vm0, %v1748_v1 }
 0x18f   : > { %v1695_v52 = vpop.eup %1694  ;;  %v724_v54 = vmax.f32 %v711_v42, 0.0  ;;  %v695_v55 = vmul.f32 %v682_v45, %v665_v35  ;;  %v668_v36 = vsub.f32 %v1961_v59, %v2055_v43 }
 0x190   : > { %v644_v41 = vadd.f32 1e-05, %v631_v46  ;;  %v619_v6 = vsub.f32 %v593_v49, %v606_v38  ;;  %v607_v28 = vmul.f32 %v2094_v51, %v2094_v51  ;;  %v683_v3 = vmul.f32 %v1695_v52, %v2060_v44 }
 0x191   : > { %1588 = vmatmul.mubr.msk.f32.gmra.mxu0 %vm479_vm2, %v724_v54  ;;  %v575_v60 = vpop.xlane.xlu1 %574  ;;  %v512_v62 = vpop.xlane.xlu0 %511  ;;  %v712_v63 = vadd.f32 %v2073_v0, %v695_v55  ;;  %v669_v55 = vsub.f32 %v1969_v2, %v2065_v57 }
 0x192   : > { %1702 = vrsqrt.f32 %v644_v41  ;;  %v632_v4 = vmax.f32 %v619_v6, 0.0  ;;  %v594_v5 = vmul.f32 0.03125, %v575_v60  ;;  %v2105_v7 = vmul.f32 0.03125, %v512_v62  ;;  %1590 = vmatprep.mubr.msk.f32.mxu0 %vm1749_vm0, %v1748_v1 }
 0x193   : > { %v1697_v9 = vpop.eup %1696  ;;  %v725_v11 = vmax.f32 %v712_v63, 0.0  ;;  %v696_v12 = vmul.f32 %v683_v3, %v666_v58 }
 0x194   : > { %v645_v47 = vadd.f32 1e-05, %v632_v4  ;;  %v620_v16 = vsub.f32 %v594_v5, %v607_v28  ;;  %v608_v13 = vmul.f32 %v2105_v7, %v2105_v7  ;;  %v684_v19 = vmul.f32 %v1697_v9, %v2060_v44 }
 0x195   : > { %1591 = vmatmul.mubr.msk.f32.gmra.mxu0 %vm479_vm2, %v725_v11  ;;  %v578_v17 = vpop.xlane.xlu1 %577  ;;  %v515_v27 = vpop.xlane.xlu0 %514  ;;  %v713_v18 = vadd.f32 %v2073_v0, %v696_v12  ;;  %v670_v4 = vsub.f32 %v1977_v8, %v2077_v10 }
 0x196   : > { %1704 = vrsqrt.f32 %v645_v47  ;;  %v633_v30 = vmax.f32 %v620_v16, 0.0  ;;  %v595_v56 = vmul.f32 0.03125, %v578_v17  ;;  %v2116_v21 = vmul.f32 0.03125, %v515_v27  ;;  %1593 = vmatprep.mubr.msk.f32.mxu0 %vm1749_vm0, %v1748_v1 }
 0x197   : > { %v1699_v22 = vpop.eup %1698  ;;  %v726_v24 = vmax.f32 %v713_v18, 0.0  ;;  %v697_v33 = vmul.f32 %v684_v19, %v667_v15  ;;  %v672_v19 = vsub.f32 %v1993_v20, %v2094_v51 }
 0x198   : > { %v646_v53 = vadd.f32 1e-05, %v633_v30  ;;  %v621_v29 = vsub.f32 %v595_v56, %v608_v13  ;;  %v609_v34 = vmul.f32 %v2116_v21, %v2116_v21  ;;  %v685_v61 = vmul.f32 %v1699_v22, %v2060_v44 }
 0x199   : > { %1594 = vmatmul.mubr.msk.f32.gmra.mxu0 %vm479_vm2, %v726_v24  ;;  %v581_v37 = vpop.xlane.xlu1 %580  ;;  %v518_v38 = vpop.xlane.xlu0 %517  ;;  %v714_v35 = vadd.f32 %v2073_v0, %v697_v33  ;;  %v671_v13 = vsub.f32 %v1985_v14, %v2085_v23  ;;  %v673_v24 = vsub.f32 %v2004_v32, %v2105_v7 }
 0x19a   : > { %1706 = vrsqrt.f32 %v646_v53  ;;  %v634_v39 = vmax.f32 %v621_v29, 0.0  ;;  %v596_v42 = vmul.f32 0.03125, %v581_v37  ;;  %v2127_v45 = vmul.f32 0.03125, %v518_v38  ;;  %1596 = vmatprep.mubr.msk.f32.mxu0 %vm1749_vm0, %v1748_v1 }
 0x19b   : > { %v1701_v46 = vpop.eup %1700  ;;  %v727_v49 = vmax.f32 %v714_v35, 0.0  ;;  %v698_v52 = vmul.f32 %v685_v61, %v668_v36 }
 0x19c   : > { %v647_v59 = vadd.f32 1e-05, %v634_v39  ;;  %v622_v43 = vsub.f32 %v596_v42, %v609_v34  ;;  %v610_v54 = vmul.f32 %v2127_v45, %v2127_v45  ;;  %v686_v28 = vmul.f32 %v1701_v46, %v2060_v44 }
 0x19d   : > { %1597 = vmatmul.mubr.msk.f32.gmra.mxu0 %vm479_vm2, %v727_v49  ;;  %v584_v41 = vpop.xlane.xlu1 %583  ;;  %v715_v6 = vadd.f32 %v2073_v0, %v698_v52  ;;  %v674_v34 = vsub.f32 %v2017_v40, %v2116_v21  ;;  %v675_v35 = vsub.f32 %v2026_v48, %v2127_v45  ;;  %v2190_v48 = vld [vmem:[%s2497_s4] sm:$0x7] }
 0x19e   : > { %1708 = vrsqrt.f32 %v647_v59  ;;  %v635_v58 = vmax.f32 %v622_v43, 0.0  ;;  %v597_v60 = vmul.f32 0.03125, %v584_v41  ;;  %v699_v3 = vmul.f32 %v686_v28, %v669_v55 }
 0x19f   : > { %v1703_v62 = vpop.eup %1702  ;;  %v728_v63 = vmax.f32 %v715_v6, 0.0 }
 0x1a0   : > { %v648_v5 = vadd.f32 1e-05, %v635_v58  ;;  %v623_v9 = vsub.f32 %v597_v60, %v610_v54  ;;  %v687_v2 = vmul.f32 %v1703_v62, %v2060_v44  ;;  %v716_v57 = vadd.f32 %v2073_v0, %v699_v3 }
 0x1a1   : > { %1600 = vmatmul.mubr.msk.f32.vlgmr.msra.gmra.mxu1 %vm479_vm2, %v728_v63 }
 0x1a2   : > { %1710 = vrsqrt.f32 %v648_v5  ;;  %v636_v11 = vmax.f32 %v623_v9, 0.0  ;;  %1602 = vmatprep.mubr.msk.f32.mxu1 %vm1749_vm0, %v1748_v1  ;;  %v700_v12 = vmul.f32 %v687_v2, %v670_v4  ;;  %v729_v16 = vmax.f32 %v716_v57, 0.0 }
 0x1a3   : > { %v1705_v47 = vpop.eup %1704 }
 0x1a4   : > { %v649_v8 = vadd.f32 1e-05, %v636_v11  ;;  %v717_v10 = vadd.f32 %v2073_v0, %v700_v12  ;;  %v688_v15 = vmul.f32 %v1705_v47, %v2060_v44  ;;  %v1171_v47 = vld [vmem:[%s2498_s5 + $0x18] sm:$0xff] }
 0x1a5   : > { %1603 = vmatmul.mubr.msk.f32.gmra.mxu1 %vm479_vm2, %v729_v16 }
 0x1a6   : > { %1712 = vrsqrt.f32 %v649_v8  ;;  %1605 = vmatprep.mubr.msk.f32.mxu1 %vm1749_vm0, %v1748_v1  ;;  %v730_v17 = vmax.f32 %v717_v10, 0.0  ;;  %v701_v27 = vmul.f32 %v688_v15, %v671_v13  ;;  %1624 = vmatpush3.msra.mxu1 %v1171_v47 }
 0x1a7   : > { %v1707_v18 = vpop.eup %1706  ;;  %1625 = vmatprep.subr.mxu1 %v1748_v1 }
 0x1a8   : > { %v718_v30 = vadd.f32 %v2073_v0, %v701_v27  ;;  %v689_v14 = vmul.f32 %v1707_v18, %v2060_v44 }
 0x1a9   : > { %1606 = vmatmul.mubr.msk.f32.gmra.mxu1 %vm479_vm2, %v730_v17 }
 0x1aa   : > { %1608 = vmatprep.mubr.msk.f32.mxu1 %vm1749_vm0, %v1748_v1  ;;  %v731_v23 = vmax.f32 %v718_v30, 0.0  ;;  %v702_v56 = vmul.f32 %v689_v14, %v672_v19 }
 0x1ab   : > { %v1709_v22 = vpop.eup %1708 }
 0x1ac   : > { %v719_v33 = vadd.f32 %v2073_v0, %v702_v56  ;;  %v690_v53 = vmul.f32 %v1709_v22, %v2060_v44 }
 0x1ad   : > { %1609 = vmatmul.mubr.msk.f32.gmra.mxu1 %vm479_vm2, %v731_v23 }
 0x1ae   : > { %1611 = vmatprep.mubr.msk.f32.mxu1 %vm1749_vm0, %v1748_v1  ;;  %v732_v20 = vmax.f32 %v719_v33, 0.0  ;;  %v703_v51 = vmul.f32 %v690_v53, %v673_v24 }
 0x1af   : > { %v1711_v29 = vpop.eup %1710 }
 0x1b0   : > { %v720_v36 = vadd.f32 %v2073_v0, %v703_v51  ;;  %v691_v37 = vmul.f32 %v1711_v29, %v2060_v44 }
 0x1b1   : > { %1612 = vmatmul.mubr.msk.f32.gmra.mxu1 %vm479_vm2, %v732_v20 }
 0x1b2   : > { %1614 = vmatprep.mubr.msk.f32.mxu1 %vm1749_vm0, %v1748_v1  ;;  %v733_v32 = vmax.f32 %v720_v36, 0.0  ;;  %v704_v7 = vmul.f32 %v691_v37, %v674_v34 }
 0x1b3   : > { %v1713_v38 = vpop.eup %1712 }
 0x1b4   : > { %v721_v61 = vadd.f32 %v2073_v0, %v704_v7  ;;  %v692_v39 = vmul.f32 %v1713_v38, %v2060_v44  ;;  %v2195_v44 = vrot.slane %v2190_v48, %v307_v26 }
 0x1b5   : > { %1615 = vmatmul.mubr.msk.f32.gmra.mxu1 %vm479_vm2, %v733_v32 }
 0x1b6   : > { %1617 = vmatprep.mubr.msk.f32.mxu1 %vm1749_vm0, %v1748_v1  ;;  %v734_v40 = vmax.f32 %v721_v61, 0.0  ;;  %v705_v21 = vmul.f32 %v692_v39, %v675_v35 }
 0x1b8   : > { %v722_v42 = vadd.f32 %v2073_v0, %v705_v21 }
 0x1b9   : > { %1618 = vmatmul.mubr.msk.f32.gmra.mxu1 %vm479_vm2, %v734_v40 }
 0x1ba   : > { %1620 = vmatprep.mubr.msk.f32.mxu1 %vm1749_vm0, %v1748_v1  ;;  %v735_v46 = vmax.f32 %v722_v42, 0.0 }
 0x1bd   : > { %1621 = vmatmul.mubr.msk.f32.gmra.mxu1 %vm479_vm2, %v735_v46 }
 0x1be   : > { %1631 = vmatprep.mubr.msk.f32.mxu1 %vm1749_vm0, %v1748_v1 }
 0x24d   : > { %v849_v0 = vpop.f32.mrf.mxu0 }
 0x24e   : > { %v2198_v45 = vadd.f32 %v849_v0, %v2195_v44  ;;  %v1170_v0 = vld [vmem:[%s2498_s5 + $0x10] sm:$0xff] }
 0x24f   : > { %v1586_v49 = vpop.f32.mrf.mxu0  ;;  %1626 = vmatpush3.msra.mxu1 %v1170_v0 }
 0x250   : > { %v913_v52 = vsel %vm479_vm2, %v2198_v45, 0.0  ;;  %v965_v59 = vmul.f32 %v2198_v45, %v2198_v45  ;;  %v1169_v49 = vld [vmem:[%s2498_s5 + $0x8] sm:$0xff]  ;;  %1627 = vmatprep.subr.mxu1 %v1748_v1 }
 0x251   : > { %914 = vadd.xlane.f32.xlu0 %v913_v52  ;;  %v854_v43 = vpop.f32.mrf.mxu0  ;;  %1628 = vmatpush3.msra.mxu1 %v1169_v49 }
 0x252   : > { %v2205_v54 = vadd.f32 %v854_v43, %v2195_v44  ;;  %v978_v55 = vsel %vm479_vm2, %v965_v59, 0.0  ;;  %1629 = vmatprep.subr.mxu1 %v1748_v1 }
 0x253   : > { %979 = vadd.xlane.f32.xlu1 %v978_v55  ;;  %v1589_v26 = vpop.f32.mrf.mxu0 }
 0x254   : > { %v916_v41 = vsel %vm479_vm2, %v2205_v54, 0.0  ;;  %v966_v6 = vmul.f32 %v2205_v54, %v2205_v54 }
 0x255   : > { %917 = vadd.xlane.f32.xlu0 %v916_v41  ;;  %v859_v28 = vpop.f32.mrf.mxu0 }
 0x256   : > { %v2213_v58 = vadd.f32 %v859_v28, %v2195_v44  ;;  %v981_v60 = vsel %vm479_vm2, %v966_v6, 0.0 }
 0x257   : > { %982 = vadd.xlane.f32.xlu1 %v981_v60  ;;  %v1592_v62 = vpop.f32.mrf.mxu0 }
 0x258   : > { %v919_v63 = vsel %vm479_vm2, %v2213_v58, 0.0  ;;  %v967_v3 = vmul.f32 %v2213_v58, %v2213_v58 }
 0x259   : > { %920 = vadd.xlane.f32.xlu0 %v919_v63  ;;  %v864_v4 = vpop.f32.mrf.mxu0 }
 0x25a   : > { %v2221_v5 = vadd.f32 %v864_v4, %v2195_v44  ;;  %v984_v9 = vsel %vm479_vm2, %v967_v3, 0.0  ;;  %v1168_v3 = vld [vmem:[%s2498_s5] sm:$0xff] }
 0x25b   : > { %985 = vadd.xlane.f32.xlu1 %v984_v9  ;;  %v1595_v2 = vpop.f32.mrf.mxu0  ;;  %1630 = vmatpush3.msra.mxu1 %v1168_v3 }
 0x25c   : > { %v922_v57 = vsel %vm479_vm2, %v2221_v5, 0.0  ;;  %v968_v11 = vmul.f32 %v2221_v5, %v2221_v5 }
 0x25d   : > { %923 = vadd.xlane.f32.xlu0 %v922_v57  ;;  %v869_v12 = vpop.f32.mrf.mxu0 }
 0x25e   : > { %v2232_v16 = vadd.f32 %v869_v12, %v2195_v44  ;;  %v987_v13 = vsel %vm479_vm2, %v968_v11, 0.0 }
 0x25f   : > { %988 = vadd.xlane.f32.xlu1 %v987_v13  ;;  %v1598_v8 = vpop.f32.mrf.mxu0 }
 0x260   : > { %v925_v10 = vsel %vm479_vm2, %v2232_v16, 0.0  ;;  %v969_v15 = vmul.f32 %v2232_v16, %v2232_v16 }
 0x261   : > { %v874_v17 = vpop.f32.mrf.mxu1  ;;  %926 = vadd.xlane.f32.xlu0 %v925_v10 }
 0x262   : > { %v2241_v27 = vadd.f32 %v874_v17, %v2195_v44  ;;  %v990_v18 = vsel %vm479_vm2, %v969_v15, 0.0 }
 0x263   : > { %v1601_v19 = vpop.f32.mrf.mxu1  ;;  %991 = vadd.xlane.f32.xlu1 %v990_v18 }
 0x264   : > { %v928_v30 = vsel %vm479_vm2, %v2241_v27, 0.0  ;;  %v970_v14 = vmul.f32 %v2241_v27, %v2241_v27 }
 0x265   : > { %v879_v23 = vpop.f32.mrf.mxu1  ;;  %929 = vadd.xlane.f32.xlu0 %v928_v30 }
 0x266   : > { %v2249_v56 = vadd.f32 %v879_v23, %v2195_v44  ;;  %v993_v22 = vsel %vm479_vm2, %v970_v14, 0.0 }
 0x267   : > { %v1604_v24 = vpop.f32.mrf.mxu1  ;;  %994 = vadd.xlane.f32.xlu1 %v993_v22 }
 0x268   : > { %v931_v33 = vsel %vm479_vm2, %v2249_v56, 0.0  ;;  %v971_v53 = vmul.f32 %v2249_v56, %v2249_v56 }
 0x269   : > { %v884_v20 = vpop.f32.mrf.mxu1  ;;  %932 = vadd.xlane.f32.xlu0 %v931_v33 }
 0x26a   : > { %v2257_v51 = vadd.f32 %v884_v20, %v2195_v44  ;;  %v996_v29 = vsel %vm479_vm2, %v971_v53, 0.0 }
 0x26b   : > { %v1607_v34 = vpop.f32.mrf.mxu1  ;;  %997 = vadd.xlane.f32.xlu1 %v996_v29 }
 0x26c   : > { %v934_v36 = vsel %vm479_vm2, %v2257_v51, 0.0  ;;  %v972_v37 = vmul.f32 %v2257_v51, %v2257_v51 }
 0x26d   : > { %v889_v32 = vpop.f32.mrf.mxu1  ;;  %935 = vadd.xlane.f32.xlu0 %v934_v36 }
 0x26e   : > { %v2265_v7 = vadd.f32 %v889_v32, %v2195_v44  ;;  %v999_v38 = vsel %vm479_vm2, %v972_v37, 0.0 }
 0x26f   : > { %v1610_v35 = vpop.f32.mrf.mxu1  ;;  %1000 = vadd.xlane.f32.xlu1 %v999_v38 }
 0x270   : > { %v937_v61 = vsel %vm479_vm2, %v2265_v7, 0.0  ;;  %v973_v39 = vmul.f32 %v2265_v7, %v2265_v7 }
 0x271   : > { %v894_v40 = vpop.f32.mrf.mxu1  ;;  %938 = vadd.xlane.f32.xlu0 %v937_v61 }
 0x272   : > { %v2273_v21 = vadd.f32 %v894_v40, %v2195_v44  ;;  %v1002_v42 = vsel %vm479_vm2, %v973_v39, 0.0 }
 0x273   : > { %v1613_v46 = vpop.f32.mrf.mxu1  ;;  %1003 = vadd.xlane.f32.xlu1 %v1002_v42 }
 0x274   : > { %v940_v52 = vsel %vm479_vm2, %v2273_v21, 0.0  ;;  %v974_v59 = vmul.f32 %v2273_v21, %v2273_v21 }
 0x275   : > { %v899_v43 = vpop.f32.mrf.mxu1  ;;  %941 = vadd.xlane.f32.xlu0 %v940_v52 }
 0x276   : > { %v2288_v55 = vadd.f32 %v899_v43, %v2195_v44  ;;  %v1005_v26 = vsel %vm479_vm2, %v974_v59, 0.0 }
 0x277   : > { %v1616_v41 = vpop.f32.mrf.mxu1  ;;  %1006 = vadd.xlane.f32.xlu1 %v1005_v26 }
 0x278   : > { %v943_v6 = vsel %vm479_vm2, %v2288_v55, 0.0  ;;  %v975_v28 = vmul.f32 %v2288_v55, %v2288_v55 }
 0x279   : > { %v904_v60 = vpop.f32.mrf.mxu1  ;;  %944 = vadd.xlane.f32.xlu0 %v943_v6 }
 0x27a   : > { %v2297_v62 = vadd.f32 %v904_v60, %v2195_v44  ;;  %v1008_v63 = vsel %vm479_vm2, %v975_v28, 0.0 }
 0x27b   : > { %v1619_v4 = vpop.f32.mrf.mxu1  ;;  %1009 = vadd.xlane.f32.xlu1 %v1008_v63 }
 0x27c   : > { %v946_v9 = vsel %vm479_vm2, %v2297_v62, 0.0  ;;  %v976_v2 = vmul.f32 %v2297_v62, %v2297_v62  ;;  %v2339_v4 = vrot.slane %v2190_v48, %v678_v31  ;;  %v2351_v31 = vrot.slane %v2190_v48, %v708_v50 }
 0x27d   : > { %v909_v57 = vpop.f32.mrf.mxu1  ;;  %947 = vadd.xlane.f32.xlu0 %v946_v9 }
 0x27e   : > { %v2308_v11 = vadd.f32 %v909_v57, %v2195_v44  ;;  %v1011_v12 = vsel %vm479_vm2, %v976_v2, 0.0 }
 0x27f   : > { %v1622_v47 = vpop.f32.mrf.mxu1  ;;  %1012 = vadd.xlane.f32.xlu1 %v1011_v12 }
 0x280   : > { %v949_v13 = vsel %vm479_vm2, %v2308_v11, 0.0  ;;  %v977_v8 = vmul.f32 %v2308_v11, %v2308_v11 }
 0x281   : > { %950 = vadd.xlane.f32.xlu0 %v949_v13 }
 0x282   : > { %v1014_v10 = vsel %vm479_vm2, %v977_v8, 0.0 }
 0x283   : > { %1015 = vadd.xlane.f32.xlu1 %v1014_v10 }
 0x2da   : > { %v915_v15 = vpop.xlane.xlu0 %914 }
 0x2db   : > { %v2316_v17 = vmul.f32 0.03125, %v915_v15 }
 0x2dc   : > { %v980_v18 = vpop.xlane.xlu1 %979 }
 0x2dd   : > { %v1030_v44 = vmul.f32 %v2316_v17, %v2316_v17  ;;  %v1017_v19 = vmul.f32 0.03125, %v980_v18 }
 0x2de   : > { %v918_v30 = vpop.xlane.xlu0 %917 }
 0x2df   : > { %v1043_v14 = vsub.f32 %v1017_v19, %v1030_v44  ;;  %v2320_v23 = vmul.f32 0.03125, %v918_v30  ;;  %v1095_v30 = vsub.f32 %v2198_v45, %v2316_v17 }
 0x2e0   : > { %v983_v22 = vpop.xlane.xlu1 %982 }
 0x2e1   : > { %v1056_v24 = vmax.f32 %v1043_v14, 0.0  ;;  %v1031_v33 = vmul.f32 %v2320_v23, %v2320_v23  ;;  %v1018_v53 = vmul.f32 0.03125, %v983_v22  ;;  %v1096_v50 = vsub.f32 %v2205_v54, %v2320_v23 }
 0x2e2   : > { %v921_v20 = vpop.xlane.xlu0 %920 }
 0x2e3   : > { %v1069_v29 = vadd.f32 1e-05, %v1056_v24  ;;  %v1044_v34 = vsub.f32 %v1018_v53, %v1031_v33  ;;  %v2324_v36 = vmul.f32 0.03125, %v921_v20 }
 0x2e4   : > { %v986_v37 = vpop.xlane.xlu1 %985 }
 0x2e5   : > { %1714 = vrsqrt.f32 %v1069_v29  ;;  %v1057_v32 = vmax.f32 %v1044_v34, 0.0  ;;  %v1032_v38 = vmul.f32 %v2324_v36, %v2324_v36  ;;  %v1019_v35 = vmul.f32 0.03125, %v986_v37 }
 0x2e6   : > { %v924_v61 = vpop.xlane.xlu0 %923  ;;  %v1097_v54 = vsub.f32 %v2213_v58, %v2324_v36 }
 0x2e7   : > { %v1070_v39 = vadd.f32 1e-05, %v1057_v32  ;;  %v2328_v40 = vmul.f32 0.03125, %v924_v61  ;;  %v1045_v42 = vsub.f32 %v1019_v35, %v1032_v38 }
 0x2e8   : > { %v989_v46 = vpop.xlane.xlu1 %988 }
 0x2e9   : > { %1716 = vrsqrt.f32 %v1070_v39  ;;  %v1033_v0 = vmul.f32 %v2328_v40, %v2328_v40  ;;  %v1020_v49 = vmul.f32 0.03125, %v989_v46  ;;  %v1058_v52 = vmax.f32 %v1045_v42, 0.0 }
 0x2ea   : > { %v927_v59 = vpop.xlane.xlu0 %926 }
 0x2eb   : > { %v1046_v43 = vsub.f32 %v1020_v49, %v1033_v0  ;;  %v2332_v26 = vmul.f32 0.03125, %v927_v59  ;;  %v1071_v41 = vadd.f32 1e-05, %v1058_v52 }
 0x2ec   : > { %v992_v6 = vpop.xlane.xlu1 %991 }
 0x2ed   : > { %v1059_v28 = vmax.f32 %v1046_v43, 0.0  ;;  %v1034_v60 = vmul.f32 %v2332_v26, %v2332_v26  ;;  %v1021_v63 = vmul.f32 0.03125, %v992_v6  ;;  %1718 = vrsqrt.f32 %v1071_v41 }
 0x2ee   : > { %v930_v3 = vpop.xlane.xlu0 %929 }
 0x2ef   : > { %v1072_v9 = vadd.f32 1e-05, %v1059_v28  ;;  %v1047_v2 = vsub.f32 %v1021_v63, %v1034_v60  ;;  %v2341_v57 = vmul.f32 0.03125, %v930_v3 }
 0x2f0   : > { %v995_v12 = vpop.xlane.xlu1 %994 }
 0x2f1   : > { %1720 = vrsqrt.f32 %v1072_v9  ;;  %v1060_v47 = vmax.f32 %v1047_v2, 0.0  ;;  %v1035_v13 = vmul.f32 %v2341_v57, %v2341_v57  ;;  %v1022_v10 = vmul.f32 0.03125, %v995_v12 }
 0x2f2   : > { %v1715_v8 = vpop.eup %1714  ;;  %v933_v15 = vpop.xlane.xlu0 %932 }
 0x2f3   : > { %v1112_v18 = vmul.f32 %v1715_v8, %v2339_v4  ;;  %v1073_v44 = vadd.f32 1e-05, %v1060_v47  ;;  %v2346_v19 = vmul.f32 0.03125, %v933_v15  ;;  %v1048_v14 = vsub.f32 %v1022_v10, %v1035_v13 }
 0x2f4   : > { %v998_v22 = vpop.xlane.xlu1 %997  ;;  %v1098_v47 = vsub.f32 %v2221_v5, %v2328_v40 }
 0x2f5   : > { %1722 = vrsqrt.f32 %v1073_v44  ;;  %v1036_v24 = vmul.f32 %v2346_v19, %v2346_v19  ;;  %v1023_v33 = vmul.f32 0.03125, %v998_v22  ;;  %v1061_v20 = vmax.f32 %v1048_v14, 0.0 }
 0x2f6   : > { %v1717_v53 = vpop.eup %1716  ;;  %v936_v29 = vpop.xlane.xlu0 %935  ;;  %v1125_v34 = vmul.f32 %v1112_v18, %v1095_v30 }
 0x2f7   : > { %v1049_v37 = vsub.f32 %v1023_v33, %v1036_v24  ;;  %v2357_v32 = vmul.f32 0.03125, %v936_v29  ;;  %v1113_v25 = vmul.f32 %v1717_v53, %v2339_v4  ;;  %v1074_v48 = vadd.f32 1e-05, %v1061_v20 }
 0x2f8   : > { %v1001_v45 = vpop.xlane.xlu1 %1000  ;;  %v1142_v17 = vadd.f32 %v2351_v31, %v1125_v34  ;;  %v1099_v53 = vsub.f32 %v2232_v16, %v2332_v26 }
 0x2f9   : > { %v1062_v38 = vmax.f32 %v1049_v37, 0.0  ;;  %v1037_v35 = vmul.f32 %v2357_v32, %v2357_v32  ;;  %v1024_v61 = vmul.f32 0.03125, %v1001_v45  ;;  %1724 = vrsqrt.f32 %v1074_v48 }
 0x2fa   : > { %v939_v39 = vpop.xlane.xlu0 %938  ;;  %v1155_v42 = vmax.f32 %v1142_v17, 0.0  ;;  %v1126_v46 = vmul.f32 %v1113_v25, %v1096_v50  ;;  %v1719_v0 = vpop.eup %1718 }
 0x2fb   : > { %v1075_v49 = vadd.f32 1e-05, %v1062_v38  ;;  %v1050_v52 = vsub.f32 %v1024_v61, %v1037_v35  ;;  %v2365_v59 = vmul.f32 0.03125, %v939_v39  ;;  %v1114_v41 = vmul.f32 %v1719_v0, %v2339_v4 }
 0x2fc   : > { %1632 = vmatmul.mubr.msk.f32.vlgmr.msra.gmra.mxu1 %vm479_vm2, %v1155_v42  ;;  %v1004_v23 = vpop.xlane.xlu1 %1003  ;;  %v1143_v43 = vadd.f32 %v2351_v31, %v1126_v46  ;;  %v1100_v61 = vsub.f32 %v2241_v27, %v2341_v57 }
 0x2fd   : > { %1726 = vrsqrt.f32 %v1075_v49  ;;  %v1063_v6 = vmax.f32 %v1050_v52, 0.0  ;;  %v1038_v28 = vmul.f32 %v2365_v59, %v2365_v59  ;;  %1634 = vmatprep.mubr.msk.f32.mxu1 %vm1749_vm0, %v1748_v1  ;;  %v1025_v63 = vmul.f32 0.03125, %v1004_v23 }
 0x2fe   : > { %v1721_v60 = vpop.eup %1720  ;;  %v942_v3 = vpop.xlane.xlu0 %941  ;;  %v1156_v9 = vmax.f32 %v1143_v43, 0.0  ;;  %v1127_v58 = vmul.f32 %v1114_v41, %v1097_v54 }
 0x2ff   : > { %v1076_v36 = vadd.f32 1e-05, %v1063_v6  ;;  %v2376_v2 = vmul.f32 0.03125, %v942_v3  ;;  %v1115_v12 = vmul.f32 %v1721_v60, %v2339_v4  ;;  %v1051_v13 = vsub.f32 %v1025_v63, %v1038_v28 }
 0x300   : > { %1635 = vmatmul.mubr.msk.f32.gmra.mxu1 %vm479_vm2, %v1156_v9  ;;  %v1007_v8 = vpop.xlane.xlu1 %1006  ;;  %v1144_v10 = vadd.f32 %v2351_v31, %v1127_v58  ;;  %v1101_v28 = vsub.f32 %v2249_v56, %v2346_v19  ;;  %v1102_v56 = vsub.f32 %v2257_v51, %v2357_v32  ;;  %v1103_v51 = vsub.f32 %v2265_v7, %v2365_v59 }
 0x301   : > { %1728 = vrsqrt.f32 %v1076_v36  ;;  %v1039_v15 = vmul.f32 %v2376_v2, %v2376_v2  ;;  %v1026_v18 = vmul.f32 0.03125, %v1007_v8  ;;  %1637 = vmatprep.mubr.msk.f32.mxu1 %vm1749_vm0, %v1748_v1  ;;  %v1064_v30 = vmax.f32 %v1051_v13, 0.0 }
 0x302   : > { %v1723_v44 = vpop.eup %1722  ;;  %v945_v14 = vpop.xlane.xlu0 %944  ;;  %v1157_v22 = vmax.f32 %v1144_v10, 0.0  ;;  %v1128_v24 = vmul.f32 %v1115_v12, %v1098_v47 }
 0x303   : > { %v1052_v5 = vsub.f32 %v1026_v18, %v1039_v15  ;;  %v2387_v40 = vmul.f32 0.03125, %v945_v14  ;;  %v1116_v33 = vmul.f32 %v1723_v44, %v2339_v4  ;;  %v1077_v20 = vadd.f32 1e-05, %v1064_v30 }
 0x304   : > { %1638 = vmatmul.mubr.msk.f32.gmra.mxu1 %vm479_vm2, %v1157_v22  ;;  %v1010_v29 = vpop.xlane.xlu1 %1009  ;;  %v1145_v34 = vadd.f32 %v2351_v31, %v1128_v24 }
 0x305   : > { %v1065_v37 = vmax.f32 %v1052_v5, 0.0  ;;  %v1040_v25 = vmul.f32 %v2387_v40, %v2387_v40  ;;  %v1027_v50 = vmul.f32 0.03125, %v1010_v29  ;;  %1640 = vmatprep.mubr.msk.f32.mxu1 %vm1749_vm0, %v1748_v1  ;;  %1730 = vrsqrt.f32 %v1077_v20 }
 0x306   : > { %v948_v48 = vpop.xlane.xlu0 %947  ;;  %v1158_v45 = vmax.f32 %v1145_v34, 0.0  ;;  %v1129_v17 = vmul.f32 %v1116_v33, %v1099_v53  ;;  %v1725_v38 = vpop.eup %1724  ;;  %v1104_v20 = vsub.f32 %v2273_v21, %v2376_v2 }
 0x307   : > { %v1078_v16 = vadd.f32 1e-05, %v1065_v37  ;;  %v1053_v26 = vsub.f32 %v1027_v50, %v1040_v25  ;;  %v2398_v35 = vmul.f32 0.03125, %v948_v48  ;;  %v1117_v46 = vmul.f32 %v1725_v38, %v2339_v4 }
 0x308   : > { %1641 = vmatmul.mubr.msk.f32.gmra.mxu1 %vm479_vm2, %v1158_v45  ;;  %v1013_v39 = vpop.xlane.xlu1 %1012  ;;  %v1146_v42 = vadd.f32 %v2351_v31, %v1129_v17  ;;  %v1105_v25 = vsub.f32 %v2288_v55, %v2387_v40 }
 0x309   : > { %1732 = vrsqrt.f32 %v1078_v16  ;;  %v1066_v0 = vmax.f32 %v1053_v26, 0.0  ;;  %v1041_v49 = vmul.f32 %v2398_v35, %v2398_v35  ;;  %1643 = vmatprep.mubr.msk.f32.mxu1 %vm1749_vm0, %v1748_v1  ;;  %v1028_v54 = vmul.f32 0.03125, %v1013_v39 }
 0x30a   : > { %v1727_v52 = vpop.eup %1726  ;;  %v951_v23 = vpop.xlane.xlu0 %950  ;;  %v1159_v43 = vmax.f32 %v1146_v42, 0.0  ;;  %v1130_v27 = vmul.f32 %v1117_v46, %v1100_v61  ;;  %v1106_v38 = vsub.f32 %v2297_v62, %v2398_v35 }
 0x30b   : > { %v1079_v57 = vadd.f32 1e-05, %v1066_v0  ;;  %v2409_v41 = vmul.f32 0.03125, %v951_v23  ;;  %v1118_v6 = vmul.f32 %v1727_v52, %v2339_v4  ;;  %v1054_v60 = vsub.f32 %v1028_v54, %v1041_v49 }
 0x30c   : > { %1644 = vmatmul.mubr.msk.f32.gmra.mxu1 %vm479_vm2, %v1159_v43  ;;  %v1016_v63 = vpop.xlane.xlu1 %1015  ;;  %v1147_v3 = vadd.f32 %v2351_v31, %v1130_v27 }
 0x30d   : > { %1734 = vrsqrt.f32 %v1079_v57  ;;  %v1042_v9 = vmul.f32 %v2409_v41, %v2409_v41  ;;  %v1029_v58 = vmul.f32 0.03125, %v1016_v63  ;;  %1646 = vmatprep.mubr.msk.f32.mxu1 %vm1749_vm0, %v1748_v1  ;;  %v1067_v12 = vmax.f32 %v1054_v60, 0.0 }
 0x30e   : > { %v1729_v36 = vpop.eup %1728  ;;  %v1160_v47 = vmax.f32 %v1147_v3, 0.0  ;;  %v1131_v13 = vmul.f32 %v1118_v6, %v1101_v28  ;;  %v1107_v61 = vsub.f32 %v2308_v11, %v2409_v41  ;;  %v1450_v11 = vld [vmem:[%s2499_s6] ss:$0 sm:$0xff] }
 0x30f   : > { %v1055_v19 = vsub.f32 %v1029_v58, %v1042_v9  ;;  %v1119_v8 = vmul.f32 %v1729_v36, %v2339_v4  ;;  %v1080_v10 = vadd.f32 1e-05, %v1067_v12 }
 0x310   : > { %1647 = vmatmul.mubr.msk.f32.gmra.mxu1 %vm479_vm2, %v1160_v47  ;;  %v1148_v15 = vadd.f32 %v2351_v31, %v1131_v13 }
 0x311   : > { %v1068_v18 = vmax.f32 %v1055_v19, 0.0  ;;  %1649 = vmatprep.mubr.msk.f32.mxu1 %vm1749_vm0, %v1748_v1  ;;  %v1132_v44 = vmul.f32 %v1119_v8, %v1102_v56  ;;  %1736 = vrsqrt.f32 %v1080_v10 }
 0x312   : > { %v1161_v30 = vmax.f32 %v1148_v15, 0.0  ;;  %v1731_v14 = vpop.eup %1730 }
 0x313   : > { %v1081_v22 = vadd.f32 1e-05, %v1068_v18  ;;  %v1149_v24 = vadd.f32 %v2351_v31, %v1132_v44  ;;  %v1120_v32 = vmul.f32 %v1731_v14, %v2339_v4 }
 0x314   : > { %1650 = vmatmul.mubr.msk.f32.gmra.mxu1 %vm479_vm2, %v1161_v30 }
 0x315   : > { %1738 = vrsqrt.f32 %v1081_v22  ;;  %1652 = vmatprep.mubr.msk.f32.mxu1 %vm1749_vm0, %v1748_v1  ;;  %v1162_v5 = vmax.f32 %v1149_v24, 0.0  ;;  %v1133_v53 = vmul.f32 %v1120_v32, %v1103_v51 }
 0x316   : > { %v1733_v33 = vpop.eup %1732 }
 0x317   : > { %v1121_v29 = vmul.f32 %v1733_v33, %v2339_v4  ;;  %v1150_v7 = vadd.f32 %v2351_v31, %v1133_v53 }
 0x318   : > { %1653 = vmatmul.mubr.msk.f32.gmra.mxu1 %vm479_vm2, %v1162_v5 }
 0x319   : > { %1655 = vmatprep.mubr.msk.f32.mxu1 %vm1749_vm0, %v1748_v1  ;;  %v1134_v59 = vmul.f32 %v1121_v29, %v1104_v20  ;;  %v1163_v37 = vmax.f32 %v1150_v7, 0.0 }
 0x31a   : > { %v1735_v34 = vpop.eup %1734 }
 0x31b   : > { %v1151_v50 = vadd.f32 %v2351_v31, %v1134_v59  ;;  %v1122_v48 = vmul.f32 %v1735_v34, %v2339_v4 }
 0x31c   : > { %1656 = vmatmul.mubr.msk.f32.gmra.mxu1 %vm479_vm2, %v1163_v37 }
 0x31d   : > { %1658 = vmatprep.mubr.msk.f32.mxu1 %vm1749_vm0, %v1748_v1  ;;  %v1164_v21 = vmax.f32 %v1151_v50, 0.0  ;;  %v1135_v2 = vmul.f32 %v1122_v48, %v1105_v25 }
 0x31e   : > { %v1737_v45 = vpop.eup %1736 }
 0x31f   : > { %v1152_v17 = vadd.f32 %v2351_v31, %v1135_v2  ;;  %v1123_v55 = vmul.f32 %v1737_v45, %v2339_v4 }
 0x320   : > { %1659 = vmatmul.mubr.msk.f32.gmra.mxu1 %vm479_vm2, %v1164_v21 }
 0x321   : > { %1661 = vmatprep.mubr.msk.f32.mxu1 %vm1749_vm0, %v1748_v1  ;;  %v1165_v40 = vmax.f32 %v1152_v17, 0.0  ;;  %v1136_v26 = vmul.f32 %v1123_v55, %v1106_v38 }
 0x322   : > { %v1739_v16 = vpop.eup %1738 }
 0x323   : > { %v1124_v39 = vmul.f32 %v1739_v16, %v2339_v4  ;;  %v1153_v62 = vadd.f32 %v2351_v31, %v1136_v26 }
 0x324   : > { %1662 = vmatmul.mubr.msk.f32.gmra.mxu1 %vm479_vm2, %v1165_v40 }
 0x325   : > { %1664 = vmatprep.mubr.msk.f32.mxu1 %vm1749_vm0, %v1748_v1  ;;  %v1137_v35 = vmul.f32 %v1124_v39, %v1107_v61  ;;  %v1166_v42 = vmax.f32 %v1153_v62, 0.0 }
 0x327   : > { %v1154_v46 = vadd.f32 %v2351_v31, %v1137_v35 }
 0x328   : > { %1665 = vmatmul.mubr.msk.f32.gmra.mxu1 %vm479_vm2, %v1166_v42 }
 0x329   : > { %1667 = vmatprep.mubr.msk.f32.mxu1 %vm1749_vm0, %v1748_v1  ;;  %v1167_v0 = vmax.f32 %v1154_v46, 0.0 }
 0x32c   : > { %1668 = vmatmul.mubr.msk.f32.gmra.mxu1 %vm479_vm2, %v1167_v0 }
 0x3bc   : > { %v1284_v4 = vpop.f32.mrf.mxu1 }
 0x3bd   : > { %v1285_v31 = vadd.f32 %v1450_v11, %v1284_v4 }
 0x3be   : > { %v1633_v1 = vpop.f32.mrf.mxu1 }
 0x3bf   : > { %1348 = vst [vmem:[%s2475_s30] sm:$0xff] %v1285_v31 }
 0x3c0   : > { %v1289_v49 = vpop.f32.mrf.mxu1 }
 0x3c1   : > { %v1290_v52 = vadd.f32 %v1450_v11, %v1289_v49 }
 0x3c2   : > { %v1636_v54 = vpop.f32.mrf.mxu1 }
 0x3c3   : > { %1349 = vst [vmem:[%s2475_s30 + $0x8] sm:$0xff] %v1290_v52 }
 0x3c4   : > { %v1294_v23 = vpop.f32.mrf.mxu1 }
 0x3c5   : > { %v1295_v43 = vadd.f32 %v1450_v11, %v1294_v23 }
 0x3c6   : > { %v1639_v27 = vpop.f32.mrf.mxu1 }
 0x3c7   : > { %1350 = vst [vmem:[%s2475_s30 + $0x10] sm:$0xff] %v1295_v43 }
 0x3c8   : > { %v1299_v57 = vpop.f32.mrf.mxu1 }
 0x3c9   : > { %v1300_v41 = vadd.f32 %v1450_v11, %v1299_v57 }
 0x3ca   : > { %v1642_v6 = vpop.f32.mrf.mxu1 }
 0x3cb   : > { %1351 = vst [vmem:[%s2475_s30 + $0x18] sm:$0xff] %v1300_v41 }
 0x3cc   : > { %v1304_v28 = vpop.f32.mrf.mxu1 }
 0x3cd   : > { %v1305_v60 = vadd.f32 %v1450_v11, %v1304_v28 }
 0x3ce   : > { %v1645_v63 = vpop.f32.mrf.mxu1 }
 0x3cf   : > { %1352 = vst [vmem:[%s2475_s30 + $0x20] sm:$0xff] %v1305_v60 }
 0x3d0   : > { %v1309_v3 = vpop.f32.mrf.mxu1 }
 0x3d1   : > { %v1310_v9 = vadd.f32 %v1450_v11, %v1309_v3 }
 0x3d2   : > { %v1648_v58 = vpop.f32.mrf.mxu1 }
 0x3d3   : > { %1353 = vst [vmem:[%s2475_s30 + $0x28] sm:$0xff] %v1310_v9 }
 0x3d4   : > { %v1314_v36 = vpop.f32.mrf.mxu1 }
 0x3d5   : > { %v1315_v12 = vadd.f32 %v1450_v11, %v1314_v36 }
 0x3d6   : > { %v1651_v47 = vpop.f32.mrf.mxu1 }
 0x3d7   : > { %1354 = vst [vmem:[%s2475_s30 + $0x30] sm:$0xff] %v1315_v12 }
 0x3d8   : > { %v1319_v13 = vpop.f32.mrf.mxu1 }
 0x3d9   : > { %v1320_v56 = vadd.f32 %v1450_v11, %v1319_v13 }
 0x3da   : > { %v1654_v19 = vpop.f32.mrf.mxu1 }
 0x3db   : > { %1355 = vst [vmem:[%s2475_s30 + $0x38] sm:$0xff] %v1320_v56 }
 0x3dc   : > { %v1324_v8 = vpop.f32.mrf.mxu1 }
 0x3dd   : > { %v1325_v10 = vadd.f32 %v1450_v11, %v1324_v8 }
 0x3de   : > { %v1657_v15 = vpop.f32.mrf.mxu1 }
 0x3df   : > { %1356 = vst [vmem:[%s2475_s30 + $0x40] sm:$0xff] %v1325_v10 }
 0x3e0   : > { %v1329_v18 = vpop.f32.mrf.mxu1 }
 0x3e1   : > { %v1330_v44 = vadd.f32 %v1450_v11, %v1329_v18 }
 0x3e2   : > { %v1660_v30 = vpop.f32.mrf.mxu1 }
 0x3e3   : > { %1357 = vst [vmem:[%s2475_s30 + $0x48] sm:$0xff] %v1330_v44 }
 0x3e4   : > { %v1334_v14 = vpop.f32.mrf.mxu1 }
 0x3e5   : > { %v1335_v22 = vadd.f32 %v1450_v11, %v1334_v14 }
 0x3e6   : > { %v1663_v24 = vpop.f32.mrf.mxu1 }
 0x3e7   : > { %1358 = vst [vmem:[%s2475_s30 + $0x50] sm:$0xff] %v1335_v22 }
 0x3e8   : > { %v1339_v51 = vpop.f32.mrf.mxu1 }
 0x3e9   : > { %v1340_v32 = vadd.f32 %v1450_v11, %v1339_v51 }
 0x3ea   : > { %v1666_v5 = vpop.f32.mrf.mxu1 }
 0x3eb   : > { %1359 = vst [vmem:[%s2475_s30 + $0x58] sm:$0xff] %v1340_v32 }
 0x3ec   : > { %v1344_v33 = vpop.f32.mrf.mxu1 }
 0x3ed   : > { %v1345_v53 = vadd.f32 %v1450_v11, %v1344_v33 }
 0x3ee   : > { %v1669_v20 = vpop.f32.mrf.mxu1 }
 0x3ef   : > { %1360 = vst [vmem:[%s2475_s30 + $0x60] sm:$0xff] %v1345_v53 }
 0x3f0 PF: > { %s17_s24 = sadd.s32 1, %s1746_s24  }
 0x3f1   : > { %p14_p4 = scmp.ge.s32.totalorder %s17_s24, 4  }
 0x3f3   :  { %16 = sbr.rel (!%p14_p4) target bundleno = 1 (0x1), region = 78 }

</bundles_post_ra>
